<compile_context>
chip_gen: v6e
topology: v6e:2x2x1
jax: 0.10.0
libtpu: 0.0.40
codegen_flags: <defaults>
</compile_context>

<pallas_src>
import jax
import jax.numpy as jnp
from jax.experimental import pallas as pl
from jax.experimental.pallas import tpu as pltpu

_LANE = 128


def _cdiv(a, b):
    return -(-a // b)


def _round_up(x, m):
    return _cdiv(x, m) * m


def _pad_to(a, shape):
    pads = [(0, s - d) for d, s in zip(a.shape, shape)]
    return jnp.pad(a, pads)


def _generator_kernel(x_ref,
                      w1_ref, b1_ref,
                      w2_ref, b2_ref,
                      w3_ref, b3_ref,
                      w4_ref, b4_ref,
                      o_ref):
    """Fused MLP: relu(x@W1+b1) -> relu(.@W2+b2) -> relu(.@W3+b3) -> tanh(.@W4+b4)."""
    # bf16 cast happens in-register; x stays compact (latent lanes) at HBM/VMEM.
    x = x_ref[...].astype(jnp.bfloat16)

    h = jnp.dot(x, w1_ref[...], preferred_element_type=jnp.float32) + b1_ref[...]
    h = jnp.maximum(h, 0.0).astype(jnp.bfloat16)

    h = jnp.dot(h, w2_ref[...], preferred_element_type=jnp.float32) + b2_ref[...]
    h = jnp.maximum(h, 0.0).astype(jnp.bfloat16)

    h = jnp.dot(h, w3_ref[...], preferred_element_type=jnp.float32) + b3_ref[...]
    h = jnp.maximum(h, 0.0).astype(jnp.bfloat16)

    h = jnp.dot(h, w4_ref[...], preferred_element_type=jnp.float32) + b4_ref[...]

    o_ref[...] = jnp.tanh(h).astype(o_ref.dtype)


def prepare_generator_params(params):
    """Pad/cast weights ONCE: bf16 weights, f32 biases.

    Only the hidden feature dims are padded to 128 lanes (zero padding keeps
    padded lanes inert through ReLU); the input (latent) and output (airfoil)
    dims stay compact so x and the kernel output keep their natural widths at
    the HBM boundary.
    """
    latent = params["w1"].shape[0]
    out_dim = params["w4"].shape[1]
    d1 = _round_up(params["w1"].shape[1], _LANE)   # 64  -> 128
    d2 = _round_up(params["w2"].shape[1], _LANE)   # 128 -> 128
    d3 = _round_up(params["w3"].shape[1], _LANE)   # 100 -> 128
    w_shapes = [(latent, d1), (d1, d2), (d2, d3), (d3, out_dim)]
    b_shapes = [(1, d1), (1, d2), (1, d3), (1, out_dim)]
    ws = tuple(_pad_to(params[f"w{i}"], s).astype(jnp.bfloat16)
               for i, s in zip(range(1, 5), w_shapes))
    bs = tuple(_pad_to(params[f"b{i}"], s).astype(jnp.float32)
               for i, s in zip(range(1, 5), b_shapes))
    return {"ws": ws, "bs": bs}


def _choose_batch_tile(B):
    cap = 2048                      # big tiles amortize ~0.35 us/step overhead
    n_tiles = _cdiv(B, cap)
    if B >= 512:
        n_tiles = max(n_tiles, 2)   # >=2 "parallel" steps -> both v7x TCs busy
    return max(16, _round_up(_cdiv(B, n_tiles), 16))


def generator_forward(x, prepared, *, batch_tile=None):
    """Run the fused Generator MLP as a Pallas kernel.

    x: [B, latent_dim] float32
    prepared: output of prepare_generator_params(params).
    Returns [B, airfoil_dim] float32.
    """
    ws, bs = prepared["ws"], prepared["bs"]
    if x.dtype != jnp.float32:
        x = x.astype(jnp.float32)
    B, latent = x.shape
    assert latent == ws[0].shape[0]
    out_dim = ws[3].shape[1]

    if batch_tile is None:
        batch_tile = _choose_batch_tile(B)
    else:
        batch_tile = max(16, _round_up(batch_tile, 16))
    # Block may not exceed the array; a block equal to the full batch dim is
    # always legal, otherwise tiles are multiples of 16 (>= 8-sublane rule).
    batch_tile = min(batch_tile, B)
    grid = (_cdiv(B, batch_tile),)

    # x / out are tiled along batch only; weights & biases use a constant block
    # index so they are fetched once and stay VMEM-resident for the whole grid.
    # (Their total padded footprint is ~80 KB, so double-buffering them is
    #  harmless; pl.Buffered(1) would be a further micro-trim.)
    def rep(shape):
        return pl.BlockSpec(shape, lambda i: (0, 0))

    in_specs = [pl.BlockSpec((batch_tile, latent), lambda i: (i, 0))]
    for w, b in zip(ws, bs):
        in_specs.append(rep(w.shape))
        in_specs.append(rep(b.shape))
    out_specs = pl.BlockSpec((batch_tile, out_dim), lambda i: (i, 0))

    # Advisory cost estimate reflecting bytes actually moved / MXU work done.
    n_rows = grid[0] * batch_tile
    flops = 2 * n_rows * sum(w.shape[0] * w.shape[1] for w in ws)
    transcendentals = n_rows * out_dim
    bytes_accessed = (B * latent * 4 + B * out_dim * 4
                      + sum(int(w.size) * 2 for w in ws)
                      + sum(int(b.size) * 4 for b in bs))
    cost = pl.CostEstimate(flops=int(flops),
                           transcendentals=int(transcendentals),
                           bytes_accessed=int(bytes_accessed))

    return pl.pallas_call(
        _generator_kernel,
        out_shape=jax.ShapeDtypeStruct((B, out_dim), jnp.float32),
        grid_spec=pltpu.PrefetchScalarGridSpec(
            num_scalar_prefetch=0,
            grid=grid,
            in_specs=in_specs,
            out_specs=out_specs,
        ),
        compiler_params=pltpu.CompilerParams(
            dimension_semantics=("parallel",)),
        cost_estimate=cost,
    )(x,
      ws[0], bs[0],
      ws[1], bs[1],
      ws[2], bs[2],
      ws[3], bs[3])


def init_generator_params(key, latent_dim, airfoil_dim):
    """Parameter init matching the PyTorch module's shapes.

    PyTorch Linear weight is [out, in]; we store the transpose [in, out].
    Biases are kept 2D [1, out] for lane-friendly broadcasting.
    """
    dims = [latent_dim, 64, 128, 100, airfoil_dim]
    params = {}
    keys = jax.random.split(key, 8)
    for li, (din, dout) in enumerate(zip(dims[:-1], dims[1:]), start=1):
        bound = 1.0 / jnp.sqrt(din)  # PyTorch default uniform bound
        params[f"w{li}"] = jax.random.uniform(
            keys[2 * (li - 1)], (din, dout), jnp.float32, -bound, bound)
        params[f"b{li}"] = jax.random.uniform(
            keys[2 * (li - 1) + 1], (1, dout), jnp.float32, -bound, bound)
    return params


def generator_reference(x, params):
    """Pure-JAX reference with the same bf16-weight / f32-accum numerics."""
    def dense(h, w, b):
        return jnp.dot(h.astype(jnp.bfloat16), w.astype(jnp.bfloat16),
                       preferred_element_type=jnp.float32) + b
    h = jax.nn.relu(dense(x, params["w1"], params["b1"]))
    h = jax.nn.relu(dense(h, params["w2"], params["b2"]))
    h = jax.nn.relu(dense(h, params["w3"], params["b3"]))
    return jnp.tanh(dense(h, params["w4"], params["b4"]))


if __name__ == "__main__":
    latent_dim = 16
    airfoil_dim = 32
    batch = 8

    key = jax.random.PRNGKey(0)
    k_param, k_x, k_x2 = jax.random.split(key, 3)

    params = init_generator_params(k_param, latent_dim, airfoil_dim)
    prepared = prepare_generator_params(params)   # pad/cast weights ONCE

    # Small batch (single grid step, block == full batch dim).
    x = jax.random.normal(k_x, (batch, latent_dim), jnp.float32)
    out = jax.block_until_ready(generator_forward(x, prepared))
    ref = generator_reference(x, params)
    assert out.shape == (batch, airfoil_dim)
    assert jnp.allclose(out, ref, atol=1e-2, rtol=1e-2)

    # Multi-step pipelined grid with a non-multiple batch (exercises the
    # partial last tile's bounded write-back; no post-kernel slice needed).
    big_batch = 300
    x_big = jax.random.normal(k_x2, (big_batch, latent_dim), jnp.float32)
    out_big = jax.block_until_ready(
        generator_forward(x_big, prepared, batch_tile=128))
    ref_big = generator_reference(x_big, params)
    assert out_big.shape == (big_batch, airfoil_dim)
    assert jnp.allclose(out_big, ref_big, atol=1e-2, rtol=1e-2)

    print("KERNEL_OK")
</pallas_src>

<mosaic_0001>
module attributes {stable_mosaic.version = 11 : i64} {
  func.func @_generator_kernel(%arg0: i32, %arg1: memref<8x16xf32, #tpu.memory_space<vmem>>, %arg2: memref<16x128xbf16, #tpu.memory_space<vmem>>, %arg3: memref<1x128xf32, #tpu.memory_space<vmem>>, %arg4: memref<128x128xbf16, #tpu.memory_space<vmem>>, %arg5: memref<1x128xf32, #tpu.memory_space<vmem>>, %arg6: memref<128x128xbf16, #tpu.memory_space<vmem>>, %arg7: memref<1x128xf32, #tpu.memory_space<vmem>>, %arg8: memref<128x32xbf16, #tpu.memory_space<vmem>>, %arg9: memref<1x32xf32, #tpu.memory_space<vmem>>, %arg10: memref<8x32xf32, #tpu.memory_space<vmem>>) attributes {dimension_semantics = [#tpu.dimension_semantics<parallel>], iteration_bounds = array<i64: 1>, scalar_prefetch = 0 : i64, scratch_operands = 0 : i64, tpu.core_type = #tpu.core_type<tc>, window_params = [{transform_indices = @transform_0, window_bounds = array<i64: 8, 16>}, {pipeline_mode = #tpu.pipeline_mode<synchronous>, transform_indices = @transform_1, window_bounds = array<i64: 16, 128>}, {pipeline_mode = #tpu.pipeline_mode<synchronous>, transform_indices = @transform_2, window_bounds = array<i64: 1, 128>}, {pipeline_mode = #tpu.pipeline_mode<synchronous>, transform_indices = @transform_3, window_bounds = array<i64: 128, 128>}, {pipeline_mode = #tpu.pipeline_mode<synchronous>, transform_indices = @transform_4, window_bounds = array<i64: 1, 128>}, {pipeline_mode = #tpu.pipeline_mode<synchronous>, transform_indices = @transform_5, window_bounds = array<i64: 128, 128>}, {pipeline_mode = #tpu.pipeline_mode<synchronous>, transform_indices = @transform_6, window_bounds = array<i64: 1, 128>}, {pipeline_mode = #tpu.pipeline_mode<synchronous>, transform_indices = @transform_7, window_bounds = array<i64: 128, 32>}, {pipeline_mode = #tpu.pipeline_mode<synchronous>, transform_indices = @transform_8, window_bounds = array<i64: 1, 32>}, {transform_indices = @transform_9, window_bounds = array<i64: 8, 32>}]} {
    %c0 = arith.constant 0 : index
    %c0_0 = arith.constant 0 : index
    %0 = vector.load %arg1[%c0, %c0_0] : memref<8x16xf32, #tpu.memory_space<vmem>>, vector<8x16xf32>
    %1 = arith.truncf %0 : vector<8x16xf32> to vector<8x16xbf16>
    %c0_1 = arith.constant 0 : index
    %c0_2 = arith.constant 0 : index
    %2 = vector.load %arg2[%c0_1, %c0_2] : memref<16x128xbf16, #tpu.memory_space<vmem>>, vector<16x128xbf16>
    %cst = arith.constant dense<0.000000e+00> : vector<8x128xf32>
    %3 = tpu.matmul %1, %2, %cst {dimension_numbers = #tpu.dot_dimension_numbers<[1], [0], [0], [1], [0, 0, 1, 1], [], []>} : vector<8x16xbf16>, vector<16x128xbf16>, vector<8x128xf32> -> vector<8x128xf32>
    %c0_3 = arith.constant 0 : index
    %c0_4 = arith.constant 0 : index
    %4 = vector.load %arg3[%c0_3, %c0_4] : memref<1x128xf32, #tpu.memory_space<vmem>>, vector<1x128xf32>
    %5 = vector.broadcast %4 : vector<1x128xf32> to vector<8x128xf32>
    %6 = arith.addf %3, %5 : vector<8x128xf32>
    %cst_5 = arith.constant 0.000000e+00 : f32
    %7 = vector.broadcast %cst_5 : f32 to vector<8x128xf32>
    %8 = arith.maximumf %6, %7 : vector<8x128xf32>
    %9 = arith.truncf %8 : vector<8x128xf32> to vector<8x128xbf16>
    %c0_6 = arith.constant 0 : index
    %c0_7 = arith.constant 0 : index
    %10 = vector.load %arg4[%c0_6, %c0_7] : memref<128x128xbf16, #tpu.memory_space<vmem>>, vector<128x128xbf16>
    %cst_8 = arith.constant dense<0.000000e+00> : vector<8x128xf32>
    %11 = tpu.matmul %9, %10, %cst_8 {dimension_numbers = #tpu.dot_dimension_numbers<[1], [0], [0], [1], [0, 0, 1, 1], [], []>} : vector<8x128xbf16>, vector<128x128xbf16>, vector<8x128xf32> -> vector<8x128xf32>
    %c0_9 = arith.constant 0 : index
    %c0_10 = arith.constant 0 : index
    %12 = vector.load %arg5[%c0_9, %c0_10] : memref<1x128xf32, #tpu.memory_space<vmem>>, vector<1x128xf32>
    %13 = vector.broadcast %12 : vector<1x128xf32> to vector<8x128xf32>
    %14 = arith.addf %11, %13 : vector<8x128xf32>
    %cst_11 = arith.constant 0.000000e+00 : f32
    %15 = vector.broadcast %cst_11 : f32 to vector<8x128xf32>
    %16 = arith.maximumf %14, %15 : vector<8x128xf32>
    %17 = arith.truncf %16 : vector<8x128xf32> to vector<8x128xbf16>
    %c0_12 = arith.constant 0 : index
    %c0_13 = arith.constant 0 : index
    %18 = vector.load %arg6[%c0_12, %c0_13] : memref<128x128xbf16, #tpu.memory_space<vmem>>, vector<128x128xbf16>
    %cst_14 = arith.constant dense<0.000000e+00> : vector<8x128xf32>
    %19 = tpu.matmul %17, %18, %cst_14 {dimension_numbers = #tpu.dot_dimension_numbers<[1], [0], [0], [1], [0, 0, 1, 1], [], []>} : vector<8x128xbf16>, vector<128x128xbf16>, vector<8x128xf32> -> vector<8x128xf32>
    %c0_15 = arith.constant 0 : index
    %c0_16 = arith.constant 0 : index
    %20 = vector.load %arg7[%c0_15, %c0_16] : memref<1x128xf32, #tpu.memory_space<vmem>>, vector<1x128xf32>
    %21 = vector.broadcast %20 : vector<1x128xf32> to vector<8x128xf32>
    %22 = arith.addf %19, %21 : vector<8x128xf32>
    %cst_17 = arith.constant 0.000000e+00 : f32
    %23 = vector.broadcast %cst_17 : f32 to vector<8x128xf32>
    %24 = arith.maximumf %22, %23 : vector<8x128xf32>
    %25 = arith.truncf %24 : vector<8x128xf32> to vector<8x128xbf16>
    %c0_18 = arith.constant 0 : index
    %c0_19 = arith.constant 0 : index
    %26 = vector.load %arg8[%c0_18, %c0_19] : memref<128x32xbf16, #tpu.memory_space<vmem>>, vector<128x32xbf16>
    %cst_20 = arith.constant dense<0.000000e+00> : vector<8x32xf32>
    %27 = tpu.matmul %25, %26, %cst_20 {dimension_numbers = #tpu.dot_dimension_numbers<[1], [0], [0], [1], [0, 0, 1, 1], [], []>} : vector<8x128xbf16>, vector<128x32xbf16>, vector<8x32xf32> -> vector<8x32xf32>
    %c0_21 = arith.constant 0 : index
    %c0_22 = arith.constant 0 : index
    %28 = vector.load %arg9[%c0_21, %c0_22] : memref<1x32xf32, #tpu.memory_space<vmem>>, vector<1x32xf32>
    %29 = vector.broadcast %28 : vector<1x32xf32> to vector<8x32xf32>
    %30 = arith.addf %27, %29 : vector<8x32xf32>
    %31 = math.tanh %30 : vector<8x32xf32>
    %c0_23 = arith.constant 0 : index
    %c0_24 = arith.constant 0 : index
    %32 = vector.load %arg10[%c0_23, %c0_24] : memref<8x32xf32, #tpu.memory_space<vmem>>, vector<8x32xf32>
    tpu.vector_store %arg10[%c0_23, %c0_24], %31 {strides = array<i32>} : memref<8x32xf32, #tpu.memory_space<vmem>>, vector<8x32xf32>,
    return
  }
  func.func @transform_0(%arg0: i32) -> (i32, i32) {
    %c0_i32 = arith.constant 0 : i32
    %c0_i32_0 = arith.constant 0 : i32
    return %arg0, %c0_i32 : i32, i32
  }
  func.func @transform_1(%arg0: i32) -> (i32, i32) {
    %c0_i32 = arith.constant 0 : i32
    %c0_i32_0 = arith.constant 0 : i32
    %c0_i32_1 = arith.constant 0 : i32
    return %c0_i32, %c0_i32_0 : i32, i32
  }
  func.func @transform_2(%arg0: i32) -> (i32, i32) {
    %c0_i32 = arith.constant 0 : i32
    %c0_i32_0 = arith.constant 0 : i32
    %c0_i32_1 = arith.constant 0 : i32
    return %c0_i32, %c0_i32_0 : i32, i32
  }
  func.func @transform_3(%arg0: i32) -> (i32, i32) {
    %c0_i32 = arith.constant 0 : i32
    %c0_i32_0 = arith.constant 0 : i32
    %c0_i32_1 = arith.constant 0 : i32
    return %c0_i32, %c0_i32_0 : i32, i32
  }
  func.func @transform_4(%arg0: i32) -> (i32, i32) {
    %c0_i32 = arith.constant 0 : i32
    %c0_i32_0 = arith.constant 0 : i32
    %c0_i32_1 = arith.constant 0 : i32
    return %c0_i32, %c0_i32_0 : i32, i32
  }
  func.func @transform_5(%arg0: i32) -> (i32, i32) {
    %c0_i32 = arith.constant 0 : i32
    %c0_i32_0 = arith.constant 0 : i32
    %c0_i32_1 = arith.constant 0 : i32
    return %c0_i32, %c0_i32_0 : i32, i32
  }
  func.func @transform_6(%arg0: i32) -> (i32, i32) {
    %c0_i32 = arith.constant 0 : i32
    %c0_i32_0 = arith.constant 0 : i32
    %c0_i32_1 = arith.constant 0 : i32
    return %c0_i32, %c0_i32_0 : i32, i32
  }
  func.func @transform_7(%arg0: i32) -> (i32, i32) {
    %c0_i32 = arith.constant 0 : i32
    %c0_i32_0 = arith.constant 0 : i32
    %c0_i32_1 = arith.constant 0 : i32
    return %c0_i32, %c0_i32_0 : i32, i32
  }
  func.func @transform_8(%arg0: i32) -> (i32, i32) {
    %c0_i32 = arith.constant 0 : i32
    %c0_i32_0 = arith.constant 0 : i32
    %c0_i32_1 = arith.constant 0 : i32
    return %c0_i32, %c0_i32_0 : i32, i32
  }
  func.func @transform_9(%arg0: i32) -> (i32, i32) {
    %c0_i32 = arith.constant 0 : i32
    %c0_i32_0 = arith.constant 0 : i32
    return %arg0, %c0_i32 : i32, i32
  }
}

</mosaic_0001>

<bundles_post_ra>
// kernel: tpu_custom_call.1
= control target key start
LH: loop header
LB: loop body
LE: loop exit
PB: predicated region body
PF: predicated region fallthrough
CT: control target
= control target key end

     0   :  { %14 = vsyncpa [#allocation3], 0  ;;  %s829_s0 = inlined_call_operand.vmem [shape: f32[8,16], index: 0, kind: input, shape index: {}]   ;;  %s830_s1 = inlined_call_operand.vmem [shape: bf16[16,128], index: 1, kind: input, shape index: {}]   ;;  %s831_s2 = inlined_call_operand.vmem [shape: f32[1,128], index: 2, kind: input, shape index: {}]   ;;  %s832_s3 = inlined_call_operand.vmem [shape: bf16[128,128], index: 3, kind: input, shape index: {}]   ;;  %s833_s4 = inlined_call_operand.vmem [shape: f32[1,128], index: 4, kind: input, shape index: {}]   ;;  %s834_s5 = inlined_call_operand.hbm [shape: bf16[128,128], index: 5, kind: input, shape index: {}]   ;;  %s835_s6 = inlined_call_operand.vmem [shape: f32[1,128], index: 6, kind: input, shape index: {}]   ;;  %s836_s7 = inlined_call_operand.vmem [shape: bf16[128,32], index: 7, kind: input, shape index: {}]   ;;  %s837_s8 = inlined_call_operand.vmem [shape: f32[1,32], index: 8, kind: input, shape index: {}]   ;;  %s838_s9 = inlined_call_operand.hbm [shape: f32[8,32], index: 9, kind: output, shape index: {}]  }
   0x1   :  { %15 = vsyncpa [#allocation4], 0  ;;  %s668_s30 = smov [#allocation2]  }
   0x2   :  { %s31_s10 = sshll.u32 %s668_s30, 4  ;;  %s32_s10 = int_to_ptr.vmem [resolvable:$true] %s31_s10 }
   0x3   :  { %s632_s11 = scalar_lea.vmem %s32_s10, 1024  ;;  %p637_p1 = scmp.lt.s32.totalorder %s32_s10, %s32_s10 }
   0x4   :  { %p633_p0 = scmp.ne.s32.totalorder %s32_s10, %s632_s11  ;;  %p638_p2 = scmp.lt.s32.totalorder %s632_s11, %s632_s11 }
   0x6   :  { %p639_p3 = por %p638_p2, %p637_p1 }
   0x8   :  { %p640_p4 = pnand %p639_p3, %p633_p0 }
   0xa   :  { %643 = shalt.err (!%p640_p4)
}
   0xb   :  { %s669_s12 = smov 64   ;;  %s670_s13 = smov 4  }
   0xc   :  { %37 = dma.hbm_to_vmem [thread:$0]  %s834_s5, 1024, %s32_s10, [#allocation3], %s669_s12, %s669_s12, %s670_s13  }
   0xd   :  { %664 = dma.done.wait [#allocation3], 1024  }
   0xe   :  { %665 = vsyncadd [#allocation3], 4294966272  ;;  %v671_v0 = vmov 0.0   ;;  %vm672_vm0 = vmmov 0   ;;  %v597_v1 = vld [vmem:[%s830_s1] sm:$0xff]   ;;  %vm65_vm1 = vcmask 130048  }
   0xf   :  { %525 = vmatprep.subr.bf16.mxu0 %v671_v0  ;;  %527 = vmatprep.mubr.msk.bf16.mxu0 %vm672_vm0, %v671_v0  ;;  %v48_v2 = vld [vmem:[%s829_s0] sm:$0xff]  ;;  %v598_v4 = vld [vmem:[%s832_s3 + $0x38] sm:$0xff]   ;;  %v599_v5 = vld [vmem:[%s832_s3 + $0x30] sm:$0xff]   ;;  %vm449_vm2 = vcmask 261120  }
  0x10   :  { %531 = vmatprep.subr.bf16.mxu1 %v671_v0  ;;  %547 = vmatprep.mubr.msk.bf16.mxu1 %vm672_vm0, %v671_v0  ;;  %v49_v3 = vpack.c.bf16 %v48_v2, %v48_v2  ;;  %v600_v6 = vld [vmem:[%s832_s3 + $0x28] sm:$0xff]   ;;  %v601_v7 = vld [vmem:[%s832_s3 + $0x20] sm:$0xff]   ;;  %v602_v8 = vld [vmem:[%s832_s3 + $0x18] sm:$0xff]  }
  0x11   :  { %526 = vmatpush3.bf16.msra.mxu0 %v597_v1  ;;  %532 = vmatpush3.bf16.msra.mxu1 %v598_v4  ;;  %v603_v9 = vld [vmem:[%s832_s3 + $0x10] sm:$0xff]   ;;  %v604_v10 = vld [vmem:[%s832_s3 + $0x8] sm:$0xff]   ;;  %v605_v11 = vld [vmem:[%s832_s3] sm:$0xff]  }
  0x12   :  { %551 = vmatprep.subr.bf16.mxu0 %v671_v0  ;;  %533 = vmatprep.subr.bf16.mxu1 %v671_v0  ;;  %v606_v12 = vld [vmem:[#allocation2 + $0x38] sm:$0xff]   ;;  %v607_v13 = vld [vmem:[#allocation2 + $0x30] sm:$0xff]   ;;  %v608_v14 = vld [vmem:[#allocation2 + $0x28] sm:$0xff]  }
  0x13   :  { %v609_v15 = vld [vmem:[#allocation2 + $0x20] sm:$0xff]   ;;  %v610_v16 = vld [vmem:[#allocation2 + $0x18] sm:$0xff]   ;;  %v611_v17 = vld [vmem:[#allocation2 + $0x10] sm:$0xff]  }
  0x14   :  { %528 = vmatmul.mubr.msk.bf16.vlgmr.msra.gmra.mxu0 %vm65_vm1, %v49_v3  ;;  %v466_v18 = vld [vmem:[%s831_s2] ss:$0 sm:$0xff]  ;;  %v612_v26 = vld [vmem:[#allocation2 + $0x8] sm:$0xff]   ;;  %v614_v28 = vld [vmem:[%s836_s7 + $0x38] sm:$0xff]  }
  0x15   :  { %567 = vmatprep.mubr.msk.bf16.mxu0 %vm672_vm0, %v671_v0  ;;  %534 = vmatpush3.bf16.msra.mxu1 %v599_v5  ;;  %v613_v27 = vld [vmem:[#allocation2] sm:$0xff]   ;;  %v615_v29 = vld [vmem:[%s836_s7 + $0x30] sm:$0xff]   ;;  %v616_v30 = vld [vmem:[%s836_s7 + $0x28] sm:$0xff]  }
  0x16   :  { %535 = vmatprep.subr.bf16.mxu1 %v671_v0  ;;  %552 = vmatpush3.bf16.msra.mxu0 %v606_v12  ;;  %v617_v31 = vld [vmem:[%s836_s7 + $0x20] sm:$0xff]   ;;  %v618_v32 = vld [vmem:[%s836_s7 + $0x18] sm:$0xff]   ;;  %v619_v33 = vld [vmem:[%s836_s7 + $0x10] sm:$0xff]  }
  0x17   :  { %553 = vmatprep.subr.bf16.mxu0 %v671_v0  ;;  %v469_v34 = vld [vmem:[%s833_s4] ss:$0 sm:$0xff]  ;;  %v620_v42 = vld [vmem:[%s836_s7 + $0x8] sm:$0xff]  }
  0x18   :  { %v621_v43 = vld [vmem:[%s836_s7] sm:$0xff]   ;;  %s673_s7 = smov [#allocation5]  }
  0x19   :  { %536 = vmatpush3.bf16.msra.mxu1 %v600_v6  ;;  %v478_v44 = vld [vmem:[%s835_s6] ss:$0 sm:$0xff]  ;;  %s457_s6 = sshll.u32 %s673_s7, 4  ;;  %s458_s6 = int_to_ptr.vmem [resolvable:$true] %s457_s6 }
  0x1a   :  { %537 = vmatprep.subr.bf16.mxu1 %v671_v0  ;;  %554 = vmatpush3.bf16.msra.mxu0 %v607_v13  ;;  %v487_v52 = vld [vmem:[%s837_s8] ss:$0 sm:$0xff]  ;;  %s644_s30 = scalar_lea.vmem %s458_s6, 128  ;;  %p649_p6 = scmp.lt.s32.totalorder %s458_s6, %s458_s6 }
  0x1b   :  { %555 = vmatprep.subr.bf16.mxu0 %v671_v0  ;;  %p645_p5 = scmp.ne.s32.totalorder %s458_s6, %s644_s30  ;;  %p650_p7 = scmp.lt.s32.totalorder %s644_s30, %s644_s30 }
  0x1d   :  { %538 = vmatpush3.bf16.msra.mxu1 %v601_v7  ;;  %p651_p8 = por %p650_p7, %p649_p6 }
  0x1e   :  { %539 = vmatprep.subr.bf16.mxu1 %v671_v0  ;;  %556 = vmatpush3.bf16.msra.mxu0 %v608_v14 }
  0x1f   :  { %557 = vmatprep.subr.bf16.mxu0 %v671_v0  ;;  %p652_p9 = pnand %p651_p8, %p645_p5 }
  0x21   :  { %540 = vmatpush3.bf16.msra.mxu1 %v602_v8 }
  0x22   :  { %541 = vmatprep.subr.bf16.mxu1 %v671_v0  ;;  %558 = vmatpush3.bf16.msra.mxu0 %v609_v15 }
  0x23   :  { %559 = vmatprep.subr.bf16.mxu0 %v671_v0 }
  0x25   :  { %542 = vmatpush3.bf16.msra.mxu1 %v603_v9 }
  0x26   :  { %543 = vmatprep.subr.bf16.mxu1 %v671_v0  ;;  %560 = vmatpush3.bf16.msra.mxu0 %v610_v16 }
  0x27   :  { %561 = vmatprep.subr.bf16.mxu0 %v671_v0 }
  0x29   :  { %544 = vmatpush3.bf16.msra.mxu1 %v604_v10 }
  0x2a   :  { %545 = vmatprep.subr.bf16.mxu1 %v671_v0  ;;  %562 = vmatpush3.bf16.msra.mxu0 %v611_v17 }
  0x2b   :  { %563 = vmatprep.subr.bf16.mxu0 %v671_v0 }
  0x2d   :  { %546 = vmatpush3.bf16.msra.mxu1 %v605_v11 }
  0x2e   :  { %571 = vmatprep.subr.bf16.mxu1 %v671_v0  ;;  %564 = vmatpush3.bf16.msra.mxu0 %v612_v26 }
  0x2f   :  { %565 = vmatprep.subr.bf16.mxu0 %v671_v0 }
  0x32   :  { %566 = vmatpush3.bf16.msra.mxu0 %v613_v27 }
  0xd4   :  { %v103_v19 = vpop.f32.mrf.mxu0 }
  0xd5   :  { %v104_v20 = vadd.f32 %v466_v18, %v103_v19 }
  0xd6   :  { %v529_v21 = vpop.f32.mrf.mxu0 }
  0xd7   :  { %v109_v22 = vmax.f32 %v104_v20, 0.0 }
  0xd8   :  { %v106_v23 = vpop.f32.mrf.mxu0 }
  0xd9   :  { %v110_v24 = vpack.c.bf16 %v109_v22, %v109_v22 }
  0xda   :  { %v530_v25 = vpop.f32.mrf.mxu0 }
  0xdb   :  { %548 = vmatmul.mubr.bf16.vlgmr.msra.gmra.mxu1 %v110_v24 }
  0xdc   :  { %587 = vmatprep.mubr.msk.bf16.mxu1 %vm672_vm0, %v671_v0  ;;  %572 = vmatpush3.bf16.msra.mxu1 %v614_v28 }
  0xdd   :  { %573 = vmatprep.subr.bf16.mxu1 %v671_v0 }
  0xe0   :  { %574 = vmatpush3.bf16.msra.mxu1 %v615_v29 }
  0xe1   :  { %575 = vmatprep.subr.bf16.mxu1 %v671_v0 }
  0xe4   :  { %576 = vmatpush3.bf16.msra.mxu1 %v616_v30 }
  0xe5   :  { %577 = vmatprep.subr.bf16.mxu1 %v671_v0 }
  0xe8   :  { %578 = vmatpush3.bf16.msra.mxu1 %v617_v31 }
  0xe9   :  { %579 = vmatprep.subr.bf16.mxu1 %v671_v0 }
  0xec   :  { %580 = vmatpush3.bf16.msra.mxu1 %v618_v32 }
  0xed   :  { %581 = vmatprep.subr.bf16.mxu1 %v671_v0 }
  0xf0   :  { %582 = vmatpush3.bf16.msra.mxu1 %v619_v33 }
  0xf1   :  { %583 = vmatprep.subr.bf16.mxu1 %v671_v0 }
  0xf4   :  { %584 = vmatpush3.bf16.msra.mxu1 %v620_v42 }
  0xf5   :  { %585 = vmatprep.subr.bf16.mxu1 %v671_v0 }
  0xf8   :  { %586 = vmatpush3.bf16.msra.mxu1 %v621_v43 }
 0x19b   :  { %v216_v35 = vpop.f32.mrf.mxu1 }
 0x19c   :  { %v217_v36 = vadd.f32 %v469_v34, %v216_v35 }
 0x19d   :  { %v549_v37 = vpop.f32.mrf.mxu1 }
 0x19e   :  { %v222_v38 = vmax.f32 %v217_v36, 0.0 }
 0x19f   :  { %v219_v39 = vpop.f32.mrf.mxu1 }
 0x1a0   :  { %v223_v40 = vpack.c.bf16 %v222_v38, %v222_v38 }
 0x1a1   :  { %v550_v41 = vpop.f32.mrf.mxu1 }
 0x1a2   :  { %568 = vmatmul.mubr.bf16.vlgmr.msra.gmra.mxu0 %v223_v40 }
 0x262   :  { %v329_v45 = vpop.f32.mrf.mxu0 }
 0x263   :  { %v330_v46 = vadd.f32 %v478_v44, %v329_v45 }
 0x264   :  { %v569_v47 = vpop.f32.mrf.mxu0 }
 0x265   :  { %v335_v48 = vmax.f32 %v330_v46, 0.0 }
 0x266   :  { %v332_v49 = vpop.f32.mrf.mxu0 }
 0x267   :  { %v336_v50 = vpack.c.bf16 %v335_v48, %v335_v48 }
 0x268   :  { %v570_v51 = vpop.f32.mrf.mxu0 }
 0x269   :  { %588 = vmatmul.mubr.bf16.vlgmr.msra.gmra.mxu1 %v336_v50 }
 0x329   :  { %v442_v53 = vpop.f32.mrf.mxu1 }
 0x32a   :  { %v443_v54 = vadd.f32 %v487_v52, %v442_v53 }
 0x32b   :  { %v589_v55 = vpop.f32.mrf.mxu1 }
 0x32c   :  { %622 = vtanh.f32 %v443_v54 }
 0x32d   :  { %v445_v56 = vpop.f32.mrf.mxu1 }
 0x32f   :  { %v590_v57 = vpop.f32.mrf.mxu1 }
 0x339   :  { %v623_v58 = vpop.eup %622 }
 0x33a   :  { %450 = vst.msk [vmem:[#allocation5] sm:$0xff] %vm449_vm2, %v623_v58 }
 0x33b   :  { %655 = shalt.err (!%p652_p9)
}
 0x33c   :  { %460 = dma.vmem_to_hbm [thread:$0]  %s458_s6, 128, %s838_s9, [#allocation4]  }
 0x33d   :  { %666 = dma.done.wait [#allocation4], 128  }
 0x33e   :  { %667 = vsyncadd [#allocation4], 4294967168 }
 0x33f   :  { %464 = vsyncpa [#allocation3], 1 }
 0x340   :  { %465 = vsyncpa [#allocation4], 1 }

</bundles_post_ra>
